<compile_context>
chip_gen: v6e
topology: v6e:2x2x1
jax: 0.10.0
libtpu: 0.0.40
codegen_flags: <defaults>
</compile_context>

<pallas_src>
import functools

import jax
import jax.numpy as jnp
from jax.experimental import pallas as pl
from jax.experimental.pallas import tpu as pltpu


def _round_up(x, m):
    return ((x + m - 1) // m) * m


def _sublane_multiple(dtype):
    # Native second-minor packing: 8 rows for 4-byte, 16 for 2-byte, 32 for 1-byte.
    return {4: 8, 2: 16, 1: 32}.get(jnp.dtype(dtype).itemsize, 8)


def _num_parallel_splits():
    """Best-effort number of TensorCores a single Pallas kernel is sharded over."""
    try:
        kind = (jax.devices()[0].device_kind or "").lower()
    except Exception:
        kind = ""
    # v5e / v6e: 1 TensorCore per chip.  v7x (and v4/v5p megacore): 2.
    if any(tag in kind for tag in ("v7", "v4", "v5p")):
        return 2
    return 1


def _ranking_loss_kernel(dt_ref, out_ref, acc_ref, *, inv_half):
    k = pl.program_id(1)                  # reduction-tile axis ("arbitrary")
    nk = pl.num_programs(1)

    @pl.when(k == 0)
    def _init():
        acc_ref[...] = jnp.zeros_like(acc_ref)

    d = dt_ref[0].astype(jnp.float32)     # (tile_r, 128)
    t = dt_ref[1].astype(jnp.float32)

    # BCE(sigmoid(d), ones) with ones = 1[t > 0], in stable softplus form:
    #     loss = min(softplus(d) - 1[t > 0] * d, 100)
    # (the clamp at 100 mirrors torch.nn.BCELoss's log clamp at -100).
    e = jnp.exp(-jnp.abs(d))
    # log1p(e) without relying on a lax.log1p lowering: Taylor branch keeps
    # precision when e is tiny (padded tail: d = -200 -> e = 0 -> exactly 0).
    log1p_e = jnp.where(e > 1e-4, jnp.log(1.0 + e), e * (1.0 - 0.5 * e))
    softplus = jnp.maximum(d, 0.0) + log1p_e
    loss = jnp.minimum(softplus - jnp.where(t > 0.0, d, 0.0), 100.0)

    # Purely elementwise accumulation; padded tail elements contribute exactly
    # zero, so no index mask is needed in the hot path.
    acc_ref[...] += loss

    @pl.when(k == nk - 1)
    def _finish():
        total = jnp.sum(acc_ref[...], keepdims=True)          # (1, 1)
        out_ref[...] = jnp.broadcast_to(total * inv_half, out_ref.shape)


def _ranking_loss_pallas(pred_loss, target_loss, *, tile_rows=4096, splits=None):
    n = pred_loss.shape[0]
    assert n % 2 == 0, "RankingLoss expects an even batch size"
    half = n // 2

    dtype = jnp.result_type(pred_loss.dtype, target_loss.dtype)
    sub = _sublane_multiple(dtype)
    pred = pred_loss.astype(dtype)        # no-op unless the two inputs differ
    tgt = target_loss.astype(dtype)

    # ---- single fused XLA prep pass: slice + reverse + subtract (+pad +stack)
    # d[j] = pred[j] - pred[n-1-j], t[j] = target[j] - target[n-1-j], j < half.
    # ("detach" on target is autograd-only; a no-op in the forward pass.)
    d = pred[:half] - jnp.flip(pred[half:])
    t = tgt[:half] - jnp.flip(tgt[half:])

    rows_needed = pl.cdiv(half, 128)
    tile_rows = max(sub, _round_up(tile_rows, sub))
    if rows_needed <= tile_rows:
        tile_r, tiles_total = _round_up(rows_needed, sub), 1
    else:
        tile_r, tiles_total = tile_rows, pl.cdiv(rows_needed, tile_rows)

    if splits is None:
        splits = _num_parallel_splits()
    splits = max(1, min(int(splits), tiles_total))
    tiles_per_split = pl.cdiv(tiles_total, splits)
    half_p = splits * tiles_per_split * tile_r * 128
    rows_p = half_p // 128

    # Loss-neutral tail padding: d = -200 => softplus == 0; t = 0 => ones == 0;
    # padded elements contribute exactly zero, so the kernel needs no mask.
    pad = half_p - half
    d = jnp.pad(d, (0, pad), constant_values=-200.0)
    t = jnp.pad(t, (0, pad))
    x = jnp.stack([d, t]).reshape(2, rows_p, 128)   # one lane-dense stream

    kernel = functools.partial(_ranking_loss_kernel, inv_half=1.0 / half)
    in_spec = pl.BlockSpec((2, tile_r, 128),
                           lambda i, k: (0, i * tiles_per_split + k, 0))
    out = pl.pallas_call(
        kernel,
        out_shape=jax.ShapeDtypeStruct((splits * 8, 128), jnp.float32),
        grid_spec=pltpu.PrefetchScalarGridSpec(
            num_scalar_prefetch=0,
            grid=(splits, tiles_per_split),
            in_specs=[in_spec],
            out_specs=pl.BlockSpec((8, 128), lambda i, k: (i, 0)),
            scratch_shapes=[pltpu.VMEM((tile_r, 128), jnp.float32)],
        ),
        compiler_params=pltpu.CompilerParams(
            dimension_semantics=("parallel", "arbitrary"),
            vmem_limit_bytes=32 * 1024 * 1024),
    )(x)
    # One scaled partial per split; exact combine in the wrapper.
    return jnp.sum(out.reshape(splits, 8, 128)[:, 0, 0])


def _ranking_loss_ref(pred_loss, target_loss):
    """Pure-JAX reference mirroring the PyTorch module (sigmoid + clamped-log BCE)."""
    n = target_loss.shape[0]
    half = n // 2
    t = (target_loss - jnp.flip(target_loss, 0))[:half].astype(jnp.float32)
    ones = jnp.sign(jnp.maximum(t, 0.0))
    d = (pred_loss - jnp.flip(pred_loss, 0))[:half].astype(jnp.float32)
    p = jax.nn.sigmoid(d)
    log_p = jnp.maximum(jnp.log(p), -100.0)
    log_1mp = jnp.maximum(jnp.log(1.0 - p), -100.0)
    return jnp.mean(-(ones * log_p + (1.0 - ones) * log_1mp))


def ranking_loss(pred_loss, target_loss, *, tile_rows=4096, min_kernel_half=4096):
    """RankingLoss.forward.  Tiny problems use the fused XLA path (kernel launch
    overhead dominates below a few thousand elements)."""
    n = pred_loss.shape[0]
    assert n % 2 == 0, "RankingLoss expects an even batch size"
    if n // 2 < min_kernel_half:
        return _ranking_loss_ref(pred_loss, target_loss)
    return _ranking_loss_pallas(pred_loss, target_loss, tile_rows=tile_rows)


if __name__ == "__main__":
    key = jax.random.PRNGKey(0)
    k1, k2, k3, k4, k5, k6, k7, k8 = jax.random.split(key, 8)

    # 1) Tiny batch (module-scale shapes): dispatcher takes the pure-JAX path.
    p_small = jax.random.normal(k1, (8,), dtype=jnp.float32)
    t_small = jax.random.normal(k2, (8,), dtype=jnp.float32)
    out_small = jax.block_until_ready(ranking_loss(p_small, t_small))
    ref_small = _ranking_loss_ref(p_small, t_small)
    assert jnp.allclose(out_small, ref_small, atol=1e-5, rtol=1e-5), (out_small, ref_small)

    # 2) Force the kernel with a tiny tile and an explicit 2-way split so the
    #    (parallel x reduction) grid, the resident accumulator and the
    #    loss-neutral tail padding are all exercised (half = 5000, 5 tiles).
    p_mid = jax.random.normal(k3, (10_000,), dtype=jnp.float32)
    t_mid = jax.random.normal(k4, (10_000,), dtype=jnp.float32)
    out_mid = jax.block_until_ready(
        _ranking_loss_pallas(p_mid, t_mid, tile_rows=8, splits=2))
    ref_mid = _ranking_loss_ref(p_mid, t_mid)
    assert jnp.allclose(out_mid, ref_mid, atol=1e-5, rtol=1e-5), (out_mid, ref_mid)

    # 3) Dispatcher takes the kernel path with the default (large-tile) layout.
    p_big = jax.random.normal(k5, (16_384,), dtype=jnp.float32)
    t_big = jax.random.normal(k6, (16_384,), dtype=jnp.float32)
    out_big = jax.block_until_ready(ranking_loss(p_big, t_big))
    ref_big = _ranking_loss_ref(p_big, t_big)
    assert jnp.allclose(out_big, ref_big, atol=1e-5, rtol=1e-5), (out_big, ref_big)

    # 4) Native bf16 streaming (no eager f32 cast), multi-tile kernel path.
    p_bf = jax.random.normal(k7, (8_192,), dtype=jnp.bfloat16)
    t_bf = jax.random.normal(k8, (8_192,), dtype=jnp.bfloat16)
    out_bf = jax.block_until_ready(_ranking_loss_pallas(p_bf, t_bf, tile_rows=16))
    ref_bf = _ranking_loss_ref(p_bf, t_bf)
    assert jnp.allclose(out_bf, ref_bf, atol=1e-4, rtol=1e-4), (out_bf, ref_bf)

    print("KERNEL_OK")
</pallas_src>

<mosaic_0001>
module attributes {stable_mosaic.version = 11 : i64} {
  func.func @_ranking_loss_kernel(%arg0: i32, %arg1: i32, %arg2: memref<2x8x128xf32, #tpu.memory_space<vmem>>, %arg3: memref<8x128xf32, #tpu.memory_space<vmem>>, %arg4: memref<8x128xf32, #tpu.memory_space<vmem>>) attributes {dimension_semantics = [#tpu.dimension_semantics<parallel>, #tpu.dimension_semantics<arbitrary>], iteration_bounds = array<i64: 2, 3>, scalar_prefetch = 0 : i64, scratch_operands = 1 : i64, tpu.core_type = #tpu.core_type<tc>, window_params = [{transform_indices = @transform_0, window_bounds = array<i64: 2, 8, 128>}, {transform_indices = @transform_1, window_bounds = array<i64: 8, 128>}]} {
    %c0_i32 = arith.constant 0 : i32
    %0 = arith.cmpi eq, %arg1, %c0_i32 : i32
    %1 = arith.extui %0 : i1 to i32
    %c0_i32_0 = arith.constant 0 : i32
    %2 = arith.cmpi ne, %1, %c0_i32_0 : i32
    scf.if %2 {
      %cst_18 = arith.constant 0.000000e+00 : f32
      %38 = vector.broadcast %cst_18 : f32 to vector<8x128xf32>
      %c0_19 = arith.constant 0 : index
      %c0_20 = arith.constant 0 : index
      %39 = vector.load %arg4[%c0_19, %c0_20] : memref<8x128xf32, #tpu.memory_space<vmem>>, vector<8x128xf32>
      tpu.vector_store %arg4[%c0_19, %c0_20], %38 {strides = array<i32>} : memref<8x128xf32, #tpu.memory_space<vmem>>, vector<8x128xf32>,
    } else {
    }
    %c0 = arith.constant 0 : index
    %c0_1 = arith.constant 0 : index
    %c0_2 = arith.constant 0 : index
    %3 = vector.load %arg2[%c0, %c0_1, %c0_2] : memref<2x8x128xf32, #tpu.memory_space<vmem>>, vector<1x8x128xf32>
    %4 = vector.shape_cast %3 : vector<1x8x128xf32> to vector<8x128xf32>
    %c1 = arith.constant 1 : index
    %c0_3 = arith.constant 0 : index
    %c0_4 = arith.constant 0 : index
    %5 = vector.load %arg2[%c1, %c0_3, %c0_4] : memref<2x8x128xf32, #tpu.memory_space<vmem>>, vector<1x8x128xf32>
    %6 = vector.shape_cast %5 : vector<1x8x128xf32> to vector<8x128xf32>
    %7 = math.absf %4 : vector<8x128xf32>
    %cst = arith.constant 0.000000e+00 : f32
    %8 = vector.broadcast %cst : f32 to vector<8x128xf32>
    %9 = arith.subf %8, %7 : vector<8x128xf32>
    %10 = math.exp %9 : vector<8x128xf32>
    %cst_5 = arith.constant 9.99999974E-5 : f32
    %11 = vector.broadcast %cst_5 : f32 to vector<8x128xf32>
    %12 = arith.cmpf ogt, %10, %11 : vector<8x128xf32>
    %cst_6 = arith.constant 1.000000e+00 : f32
    %13 = vector.broadcast %cst_6 : f32 to vector<8x128xf32>
    %14 = arith.addf %13, %10 : vector<8x128xf32>
    %15 = math.log %14 : vector<8x128xf32>
    %cst_7 = arith.constant 5.000000e-01 : f32
    %16 = vector.broadcast %cst_7 : f32 to vector<8x128xf32>
    %17 = arith.mulf %16, %10 : vector<8x128xf32>
    %cst_8 = arith.constant 1.000000e+00 : f32
    %18 = vector.broadcast %cst_8 : f32 to vector<8x128xf32>
    %19 = arith.subf %18, %17 : vector<8x128xf32>
    %20 = arith.mulf %10, %19 : vector<8x128xf32>
    %21 = arith.select %12, %15, %20 : vector<8x128xi1>, vector<8x128xf32>
    %cst_9 = arith.constant 0.000000e+00 : f32
    %22 = vector.broadcast %cst_9 : f32 to vector<8x128xf32>
    %23 = arith.maximumf %4, %22 : vector<8x128xf32>
    %24 = arith.addf %23, %21 : vector<8x128xf32>
    %cst_10 = arith.constant 0.000000e+00 : f32
    %25 = vector.broadcast %cst_10 : f32 to vector<8x128xf32>
    %26 = arith.cmpf ogt, %6, %25 : vector<8x128xf32>
    %cst_11 = arith.constant 0.000000e+00 : f32
    %27 = vector.broadcast %cst_11 : f32 to vector<8x128xf32>
    %28 = arith.select %26, %4, %27 : vector<8x128xi1>, vector<8x128xf32>
    %29 = arith.subf %24, %28 : vector<8x128xf32>
    %cst_12 = arith.constant 1.000000e+02 : f32
    %30 = vector.broadcast %cst_12 : f32 to vector<8x128xf32>
    %31 = arith.minimumf %29, %30 : vector<8x128xf32>
    %c0_13 = arith.constant 0 : index
    %c0_14 = arith.constant 0 : index
    %32 = vector.load %arg4[%c0_13, %c0_14] : memref<8x128xf32, #tpu.memory_space<vmem>>, vector<8x128xf32>
    %33 = arith.addf %32, %31 : vector<8x128xf32>
    %c0_15 = arith.constant 0 : index
    %c0_16 = arith.constant 0 : index
    %34 = vector.load %arg4[%c0_15, %c0_16] : memref<8x128xf32, #tpu.memory_space<vmem>>, vector<8x128xf32>
    tpu.vector_store %arg4[%c0_15, %c0_16], %33 {strides = array<i32>} : memref<8x128xf32, #tpu.memory_space<vmem>>, vector<8x128xf32>,
    %c2_i32 = arith.constant 2 : i32
    %35 = arith.cmpi eq, %arg1, %c2_i32 : i32
    %36 = arith.extui %35 : i1 to i32
    %c0_i32_17 = arith.constant 0 : i32
    %37 = arith.cmpi ne, %36, %c0_i32_17 : i32
    scf.if %37 {
      %c0_18 = arith.constant 0 : index
      %c0_19 = arith.constant 0 : index
      %38 = vector.load %arg4[%c0_18, %c0_19] : memref<8x128xf32, #tpu.memory_space<vmem>>, vector<8x128xf32>
      %39 = vector.shape_cast %38 : vector<8x128xf32> to vector<1x8x128xf32>
      %cst_20 = arith.constant dense<0.000000e+00> : vector<1xf32>
      %40 = vector.multi_reduction <add>, %39, %cst_20 [1, 2] : vector<1x8x128xf32> to vector<1xf32>
      %41 = vector.shape_cast %40 : vector<1xf32> to vector<1x1x1xf32>
      %42 = vector.extract %41[0, 0, 0] : f32 from vector<1x1x1xf32>
      %43 = vector.broadcast %42 : f32 to vector<1x1xf32>
      %cst_21 = arith.constant 2.000000e-04 : f32
      %44 = vector.broadcast %cst_21 : f32 to vector<1x1xf32>
      %45 = arith.mulf %43, %44 : vector<1x1xf32>
      %46 = vector.shape_cast %45 : vector<1x1xf32> to vector<1x1xf32>
      %47 = vector.broadcast %46 : vector<1x1xf32> to vector<8x128xf32>
      %c0_22 = arith.constant 0 : index
      %c0_23 = arith.constant 0 : index
      %48 = vector.load %arg3[%c0_22, %c0_23] : memref<8x128xf32, #tpu.memory_space<vmem>>, vector<8x128xf32>
      tpu.vector_store %arg3[%c0_22, %c0_23], %47 {strides = array<i32>} : memref<8x128xf32, #tpu.memory_space<vmem>>, vector<8x128xf32>,
    } else {
    }
    return
  }
  func.func @transform_0(%arg0: i32, %arg1: i32) -> (i32, i32, i32) {
    %c3_i32 = arith.constant 3 : i32
    %0 = arith.muli %arg0, %c3_i32 : i32
    %1 = arith.addi %0, %arg1 : i32
    %c0_i32 = arith.constant 0 : i32
    %c0_i32_0 = arith.constant 0 : i32
    %c0_i32_1 = arith.constant 0 : i32
    return %c0_i32, %1, %c0_i32_0 : i32, i32, i32
  }
  func.func @transform_1(%arg0: i32, %arg1: i32) -> (i32, i32) {
    %c0_i32 = arith.constant 0 : i32
    %c0_i32_0 = arith.constant 0 : i32
    return %arg0, %c0_i32 : i32, i32
  }
}

</mosaic_0001>

<bundles_post_ra>
// kernel: tpu_custom_call.1
= control target key start
LH: loop header
LB: loop body
LE: loop exit
PB: predicated region body
PF: predicated region fallthrough
CT: control target
= control target key end

     0   :  { %6 = vsyncpa [#allocation4], 0  ;;  %s784_s0 = inlined_call_operand.hbm [shape: f32[2,48,128], index: 0, kind: input, shape index: {}]   ;;  %s785_s1 = inlined_call_operand.hbm [shape: f32[16,128], index: 1, kind: output, shape index: {}]  }
   0x1   :  { %8 = vsyncpa [#allocation4 + $0x1], 0 }
   0x2   :  { %9 = vsyncpa [#allocation5], 0 }
   0x3   :  { %11 = vsyncpa [#allocation5 + $0x1], 0  ;;  %s591_s6 = smov 0   ;;  %s593_s7 = smov 0  }
   0x4   :  { %s595_s8 = smov 0   ;;  %s597_s9 = smov 0  }
   0x5   :  { %s599_s10 = smov 0   ;;  %s601_s11 = smov 0  }
   0x6   :  { %s603_s12 = smov 0   ;;  %s605_s13 = smov 0  }
   0x7   :  { %s607_s14 = smov 0   ;;  %s609_s15 = smov 0  }
   0x8   :  { %s611_s16 = smov 0  }
   0x9 LB: > { %s297_s17 = sadd.s32 4294967295, %s573_s16   ;;  %s298_s18 = sadd.s32 4294967294, %s573_s16   ;;  %s573_s16 = sphi %s611_s16, %s17_s16   ;;  %s569_s15 = sphi %s609_s15, %s803_s15   ;;  %s565_s14 = sphi %s607_s14, %s802_s14   ;;  %s561_s13 = sphi %s605_s13, %s801_s13   ;;  %s557_s12 = sphi %s603_s12, %s800_s12   ;;  %s553_s11 = sphi %s601_s11, %s799_s11   ;;  %s549_s10 = sphi %s599_s10, %s798_s10   ;;  %s545_s9 = sphi %s597_s9, %s797_s9   ;;  %s541_s8 = sphi %s595_s8, %s796_s8   ;;  %s537_s7 = sphi %s593_s7, %s795_s7   ;;  %s533_s6 = sphi %s591_s6, %s794_s6  }
   0xa   : > { %s26_s19 = sadd.s32 1, %s565_s14  ;;  %s29_s20 = sadd.s32 1, %s569_s15 }
   0xb   : > { %p27_p0 = scmp.ge.s32.totalorder %s26_s19, 3  ;;  %s33_s21 = smul.u32 3, %s569_s15 }
   0xc   : > { %s40_s22 = sadd.s32 1, %s553_s11  ;;  %p47_p1 = scmp.ne.s32.totalorder %s553_s11, %s549_s10 }
   0xd   : > { %s805_s19 = smov (%p27_p0, %s26_s19), 0  ;;  %s807_s20 = smov (!%p27_p0, %s29_s20), %s569_s15 }
   0xe   : > { %s34_s23 = sadd.s32 %s565_s14, %s33_s21  ;;  %p48_p2 = scmp.eq.s32.totalorder %s573_s16, 0 }
   0xf   : > { %p31_p3 = scmp.ge.s32.totalorder %s807_s20, 2  ;;  %p53_p4 = scmp.ne.s32.totalorder %s549_s10, %s545_s9 }
  0x10   : > { %p658_p5 = por %p48_p2, %p47_p1  ;;  %p54_p6 = scmp.eq.s32.totalorder %s297_s17, 0 }
  0x11   : > { %s809_s20 = smov (%p31_p3, %s807_s20), 0  ;;  %s66_s26 = sadd.s32 1, %s541_s8 }
  0x12   : > { %788 = sst [smem:[#allocation9_spill]] %s809_s20  ;;  %p664_p7 = por %p54_p6, %p53_p4 }
  0x13   : > { %s35_s27 = smul.u32 3, %s809_s20  ;;  %s63_s28 = ssub.s32 %s569_s15, %s809_s20 }
  0x14   : > { %p64_p8 = scmp.eq.s32.totalorder %s63_s28, 0  ;;  %p76_p9 = scmp.ne.s32.totalorder %s541_s8, %s537_s7 }
  0x15   : > { %s36_s29 = sadd.s32 %s35_s27, %s805_s19  ;;  %p77_p10 = scmp.eq.s32.totalorder %s297_s17, 5 }
  0x16   : > { %s37_s30 = ssub.s32 %s34_s23, %s36_s29  ;;  %p82_p11 = scmp.ne.s32.totalorder %s537_s7, %s533_s6 }
  0x17   : > { %p38_p12 = scmp.eq.s32.totalorder %s37_s30, 0  ;;  %p677_p13 = por %p77_p10, %p76_p9 }
  0x18   : > { %s682_s3 = scalar_select %p64_p8, %s541_s8, %s66_s26  }
  0x19   : > { %s685_s4 = scalar_select %p38_p12, %s553_s11, %s40_s22  }
  0x1a   : > { %p83_p0 = scmp.eq.s32.totalorder %s298_s18, 5  ;;  %p327_p1 = scmp.lt.s32.totalorder %s573_s16, 6 }
  0x1b   : > { %s103_s5 = sand.u32 1, %s553_s11   ;;  %s302_s21 = sshll.u32 %s34_s23, 7 }
  0x1c   : > { %p691_p2 = por %p83_p0, %p82_p11  ;;  %s301_s17 = sshll.u32 %s103_s5, 4 }
  0x1d   : > { %s114_s29 = scalar_lea.hbm %s784_s0, %s302_s21  ;;  %s107_s30 = scalar_lea.vmem [#allocation3], %s301_s17 }
  0x1e   : > { %s115_s20 = sshll.u32 %s107_s30, 4  ;;  %p700_p3 = pnand %p327_p1, %p658_p5  ;;  %s116_s20 = int_to_ptr.vmem [resolvable:$true] %s115_s20 }
  0x1f   : > { %p303_p4 = scmp.ge.s32.totalorder %s573_s16, 1  ;;  %s104_s18 = scalar_lea.sflag [#allocation4], %s103_s5 }
  0x20   : > { %p427_p6 = pneg %p700_p3  ;;  %s438_s26 = scalar_lea.vmem %s116_s20, 256 }
  0x21   : > { %p439_p8 = scmp.ne.s32.totalorder %s116_s20, %s438_s26  ;;  %s575_s23 = smov [#allocation3]  }
  0x22   : > { %s443_s27 = sshll.u32 %s575_s23, 4  ;;  %s444_s27 = int_to_ptr.vmem [resolvable:$false] %s443_s27 }
  0x23   : > { %p441_p9 = pnand %p439_p8, %p427_p6  ;;  %s445_s17 = scalar_lea.vmem %s444_s27, 512 }
  0x24   : > { %p446_p11 = scmp.lt.s32.totalorder %s116_s20, %s444_s27  ;;  %p447_p12 = scmp.lt.s32.totalorder %s445_s17, %s438_s26 }
  0x25   : > { %p442_p10 = pneg %p441_p9 }
  0x26   : > { %p448_p5 = por %p447_p12, %p446_p11 }
  0x28   : > { %p449_p0 = pnand %p448_p5, %p442_p10 }
  0x2a   : > { %452 = shalt.err (!%p449_p0)
}
  0x2b   : > { %s576_s24 = smov 768   ;;  %s577_s5 = smov 128  }
  0x2c   : > { %s578_s21 = smov 8   ;;  %p123_p1 = scmp.lt.s32.totalorder %s573_s16, 7 }
  0x2d   : > { %322 = dma.hbm_to_vmem [thread:$0]  (!%p700_p3), %s114_s29, 256, %s116_s20, %s104_s18, %s576_s24, %s577_s5, %s578_s21  }
  0x2e   : > { %p124_p6 = pnand %p303_p4, %p123_p1 }
  0x2f   : > { %s129_s28 = sand.u32 (!%p124_p6), 1, %s549_s10  }
  0x30   : > { %127 = sbr.rel (%p124_p6) target bundleno = 346 (0x15a), region = 24  ;;  %s304_s30 = sshll.u32 (!%p124_p6), %s129_s28, 4 }
  0x31   : > { %s130_s26 = scalar_lea.sflag (!%p124_p6), [#allocation4], %s129_s28  ;;  %s133_s23 = scalar_lea.vmem (!%p124_p6), [#allocation3], %s304_s30 }
  0x35   : > { %524 = dma.done.wait (%p664_p7), %s130_s26, 256  }
  0x36   : > { %526 = vsyncadd (%p664_p7), %s130_s26, 4294967040  ;;  %s149_s27 = sand.u32 1, %s537_s7   ;;  %p306_p3 = scmp.ne.s32.totalorder %s557_s12, 0 }
  0x37   : > { %s720_s20 = sshll.u32 %s149_s27, 3 }
  0x38   : > { %s151_s29 = scalar_lea.vmem [#allocation6], %s720_s20  ;;  %157 = sbr.rel (%p306_p3) target bundleno = 63 (0x3f), region = 32 }
  0x3d   : > { %v579_v0 = vmov 0.0  }
  0x3e   : > { %158 = vst [vmem:[#allocation2] sm:$0xff] %v579_v0 }
  0x3f PF: > { %v159_v1 = vld [vmem:[%s133_s23] sm:$0xff]  ;;  %v307_v9 = vld [vmem:[%s133_s23 + $0x8] sm:$0xff]  ;;  %p308_p7 = scmp.ne.s32.totalorder %s557_s12, 2 }
  0x40   : > { %v162_v2 = vand.u32 2147483647, %v159_v1  ;;  %v174_v12 = vmax.f32 %v159_v1, 0.0  ;;  %vm176_vm1 = vcmp.gt.f32.partialorder %v307_v9, 0.0 }
  0x41   : > { %v177_v15 = vsel %vm176_vm1, %v159_v1, 0.0 }
  0x42   : > { %v163_v3 = vsub.f32 0.0, %v162_v2 }
  0x44   : > { %v164_v4 = vmul.f32 1.442695, %v163_v3 }
  0x45   : > { %v180_v18 = vld [vmem:[#allocation2] sm:$0xff] }
  0x46   : > { %421 = vpow2.f32 %v164_v4 }
  0x53   : > { %v422_v5 = vpop.eup %421 }
  0x54   : > { %v167_v6 = vadd.f32 1.0, %v422_v5  ;;  %v170_v7 = vmul.f32 0.5, %v422_v5  ;;  %vm166_vm0 = vcmp.gt.f32.partialorder %v422_v5, 0.0001 }
  0x56   : > { %423 = vlog2.f32 %v167_v6  ;;  %v171_v8 = vsub.f32 1.0, %v170_v7 }
  0x58   : > { %v172_v10 = vmul.f32 %v422_v5, %v171_v8 }
  0x63   : > { %v424_v11 = vpop.eup %423 }
  0x64   : > { %v169_v13 = vmul.f32 0.6931472, %v424_v11 }
  0x66   : > { %v173_v14 = vsel %vm166_vm0, %v169_v13, %v172_v10 }
  0x67   : > { %v175_v16 = vadd.f32 %v174_v12, %v173_v14 }
  0x69   : > { %v178_v17 = vsub.f32 %v175_v16, %v177_v15 }
  0x6b   : > { %v179_v19 = vmin.f32 %v178_v17, 100.0  ;;  %186 = sbr.rel (%p308_p7) target bundleno = 323 (0x143), region = 36 }
  0x6d   : > { %v181_v20 = vadd.f32 %v180_v18, %v179_v19 }
  0x6f   : > { %182 = vst [vmem:[#allocation2] sm:$0xff] %v181_v20 }
  0x76   : > { %v187_v21 = vld [vmem:[#allocation2] sm:$0xff] }
  0x77   : > { %188 = vadd.xlane.f32.xlu0 %v187_v21 }
 0x100   : > { %v189_v22 = vpop.xlane.xlu0 %188 }
 0x101   : > { %v190_v23 = vrot.slane %v189_v22, 4 }
 0x103   : > { %v191_v24 = vadd.f32 %v190_v23, %v189_v22 }
 0x105   : > { %v192_v25 = vrot.slane %v191_v24, 2 }
 0x107   : > { %v193_v26 = vadd.f32 %v192_v25, %v191_v24 }
 0x109   : > { %v194_v27 = vrot.slane %v193_v26, 1 }
 0x10b   : > { %v195_v28 = vadd.f32 %v194_v27, %v193_v26 }
 0x10d   : > { %313 = vpush %v195_v28 }
 0x13e   : > { %s314_s25 = spop %313 }
 0x13f   : > { %v197_v29 = vstv %s314_s25 }
 0x140   : > { %v198_v30 = vmul.f32 0.0002, %v197_v29 }
 0x142   : > { %199 = vst [vmem:[%s151_s29] sm:$0xff] %v198_v30 }
 0x143 PF: > { %s310_s12 = sshll.u32 %s561_s13, 7  ;;  %s214_s24 = sshll.u32 %s151_s29, 4  ;;  %s215_s24 = int_to_ptr.vmem [resolvable:$true] %s214_s24 }
 0x144   : > { %s212_s17 = scalar_lea.hbm %s785_s1, %s310_s12  ;;  %s201_s5 = scalar_lea.sflag [#allocation5], %s149_s27 }
 0x145   : > { %s453_s21 = scalar_lea.vmem %s215_s24, 128  ;;  %s580_s28 = smov [#allocation6]  }
 0x146   : > { %p454_p4 = scmp.ne.s32.totalorder %s215_s24, %s453_s21  ;;  %s457_s30 = sshll.u32 %s580_s28, 4  ;;  %s458_s30 = int_to_ptr.vmem [resolvable:$false] %s457_s30 }
 0x147   : > { %s459_s26 = scalar_lea.vmem %s458_s30, 256  ;;  %p460_p10 = scmp.lt.s32.totalorder %s215_s24, %s458_s30 }
 0x148   : > { %p455_p8 = pnand %p454_p4, %p677_p13  ;;  %p461_p11 = scmp.lt.s32.totalorder %s459_s26, %s453_s21 }
 0x14a   : > { %p456_p9 = pneg %p455_p8  ;;  %p462_p12 = por %p461_p11, %p460_p10 }
 0x14c   : > { %p463_p5 = pnand %p462_p12, %p456_p9 }
 0x14e   : > { %466 = shalt.err (!%p463_p5)
}
 0x14f   : > { %s467_s13 = scalar_lea.hbm %s212_s17, 128  ;;  %s471_s20 = scalar_lea.hbm %s785_s1, 256 }
 0x150   : > { %p468_p0 = scmp.ne.s32.totalorder %s212_s17, %s467_s13  ;;  %p472_p3 = scmp.lt.s32.totalorder %s212_s17, %s785_s1 }
 0x151   : > { %p473_p7 = scmp.lt.s32.totalorder %s471_s20, %s467_s13 }
 0x152   : > { %p469_p1 = pnand %p468_p0, %p677_p13 }
 0x153   : > { %p474_p4 = por %p473_p7, %p472_p3 }
 0x154   : > { %p470_p6 = pneg %p469_p1 }
 0x156   : > { %p475_p8 = pnand %p474_p4, %p470_p6 }
 0x158   : > { %478 = shalt.err (!%p475_p8)
}
 0x159   : > { %317 = dma.vmem_to_hbm [thread:$0]  (%p677_p13), %s215_s24, 128, %s212_s17, %s201_s5  }
 0x15a PF: > { %p328_p9 = scmp.ge.s32.totalorder %s573_s16, 2  ;;  %s226_s12 = sand.u32 1, %s533_s6  }
 0x15b   : > { %s227_s22 = scalar_lea.sflag [#allocation5], %s226_s12 }
 0x15c   : > { %p324_p10 = pnand %p328_p9, %p691_p2 }
 0x15e   : > { %p325_p11 = pneg %p324_p10 }
 0x160   : > { %528 = dma.done.wait (%p325_p11), %s227_s22, 128  }
 0x161   : > { %530 = vsyncadd (%p325_p11), %s227_s22, 4294967168  ;;  %s17_s16 = sadd.s32 1, %s573_s16   ;;  %s793_s2 = sld [smem:[#allocation9_spill]] }
 0x162   : > { %p14_p12 = scmp.ge.s32.totalorder %s17_s16, 8   ;;  %s794_s6 = smov %s537_s7 }
 0x163   : > { %s795_s7 = smov %s541_s8  ;;  %s796_s8 = smov %s682_s3 }
 0x164   : > { %s797_s9 = smov %s549_s10  ;;  %s798_s10 = smov %s553_s11 }
 0x165   : > { %s799_s11 = smov %s685_s4  ;;  %s800_s12 = smov %s565_s14 }
 0x166   : > { %s801_s13 = smov %s569_s15  ;;  %s802_s14 = smov %s805_s19 }
 0x167   : > { %s803_s15 = smov %s793_s2  ;;  %16 = sbr.rel (!%p14_p12) target bundleno = 9 (0x9), region = 78 }
 0x16c   :  { %232 = vsyncpa [#allocation4], 1 }
 0x16d   :  { %234 = vsyncpa [#allocation4 + $0x1], 1 }
 0x16e   :  { %235 = vsyncpa [#allocation5], 1 }
 0x16f   :  { %237 = vsyncpa [#allocation5 + $0x1], 1 }

</bundles_post_ra>
